<compile_context>
chip_gen: v7x
topology: tpu7x:2x2x1
jax: 0.10.0
libtpu: 0.0.40
codegen_flags: <defaults>
</compile_context>

<pallas_src>
import jax
import jax.numpy as jnp
from jax.experimental import pallas as pl
from jax.experimental.pallas import tpu as pltpu


# ---------------------------------------------------------------------------
# Tuning constants
# ---------------------------------------------------------------------------
# Problems up to this many rows skip the grid entirely (fully VMEM-resident).
_GRIDLESS_MAX_B = 4096
# Largest batch tile for the pipelined path.  At 8192 rows the double-buffered
# footprint (z lane-padded 32->128 plus out lane-padded 64->128, both f32) is
# ~16 MiB, which fits the 32 MiB scoped budget requested below on every
# generation (v7x physical VMEM = 64 MiB; v5e/v6e = 128 MiB).
_MAX_TILE_B = 8192
_VMEM_LIMIT_BYTES = 32 * 1024 * 1024


def _round_up(x, m):
    return ((x + m - 1) // m) * m


def _cost_estimate(B, Z, S):
    # Advisory only: lets XLA overlap this tiny memory-bound call with
    # neighbouring VAE ops instead of treating it as opaque.
    return pl.CostEstimate(
        flops=2 * B * Z * S,
        transcendentals=0,
        bytes_accessed=4 * (B * Z + Z * S + S + B * S),
    )


def _decoder_kernel(z_ref, w_ref, b_ref, o_ref):
    # z_ref: (tB, Z)   w_ref: (Z, S)   b_ref: (1, S)   o_ref: (tB, S)
    acc = jnp.dot(z_ref[...], w_ref[...], preferred_element_type=jnp.float32)
    o_ref[...] = (acc + b_ref[...]).astype(o_ref.dtype)


def prepare_decoder_params(weight, bias):
    """One-time parameter prep (outside the per-call hot path).

    weight: (sl, z_dim) PyTorch layout -> weight_t: (z_dim, sl), materialized
    bias:   (sl,)                      -> bias2d:   (1, sl)
    """
    weight_t = jnp.asarray(weight.T)          # materialize the transpose once
    bias2d = jnp.asarray(bias).reshape(1, -1)
    return weight_t, bias2d


def _decoder_small(z, weight_t, bias2d):
    """Gridless path: whole problem lives in VMEM; no pipeline scaffolding."""
    B, Z = z.shape
    S = weight_t.shape[1]
    vmem = pl.BlockSpec(memory_space=pltpu.MemorySpace.VMEM)
    return pl.pallas_call(
        _decoder_kernel,
        out_shape=jax.ShapeDtypeStruct((B, S), z.dtype),
        in_specs=[vmem, vmem, vmem],
        out_specs=vmem,
        cost_estimate=_cost_estimate(B, Z, S),
    )(z, weight_t, bias2d)


def _choose_tiling(B):
    """Pick (tile_b, grid) for the large-B path.

    - tile_b capped at _MAX_TILE_B and rounded up to a multiple of 8.
    - grid forced to >= 2 steps and toward an even count so v7x's two
      TensorCores both get work under dimension_semantics=("parallel",).
    - tile_b derived from cdiv(B, n_steps) so the final tile is (near) full.
    """
    n_steps = max(pl.cdiv(B, _MAX_TILE_B), 2)
    if n_steps % 2:
        n_steps += 1
    tile_b = _round_up(pl.cdiv(B, n_steps), 8)
    grid_b = pl.cdiv(B, tile_b)
    return tile_b, grid_b


def _decoder_tiled(z, weight_t, bias2d):
    """Large-B path: tile only the batch axis; weight/bias stay resident."""
    B, Z = z.shape
    S = weight_t.shape[1]
    tile_b, grid_b = _choose_tiling(B)
    return pl.pallas_call(
        _decoder_kernel,
        out_shape=jax.ShapeDtypeStruct((B, S), z.dtype),
        grid_spec=pl.GridSpec(
            grid=(grid_b,),
            in_specs=[
                pl.BlockSpec((tile_b, Z), lambda i: (i, 0)),
                pl.BlockSpec((Z, S), lambda i: (0, 0)),
                pl.BlockSpec((1, S), lambda i: (0, 0)),
            ],
            out_specs=pl.BlockSpec((tile_b, S), lambda i: (i, 0)),
        ),
        compiler_params=pltpu.CompilerParams(
            dimension_semantics=("parallel",),
            vmem_limit_bytes=_VMEM_LIMIT_BYTES,
        ),
        cost_estimate=_cost_estimate(B, Z, S),
    )(z, weight_t, bias2d)


def decoder_forward(z, weight_t, bias2d):
    """z: (B, z_dim) f32, weight_t: (z_dim, sl) f32, bias2d: (1, sl) f32 -> (B, sl)."""
    B = z.shape[0]  # static shape -> jit-safe Python branch
    if B <= _GRIDLESS_MAX_B:
        return _decoder_small(z, weight_t, bias2d)
    return _decoder_tiled(z, weight_t, bias2d)


if __name__ == "__main__":
    # Small shapes consistent with the module: params.z_dim = 32, params.sl = 64.
    batch, z_dim, sl = 8, 32, 64

    key = jax.random.PRNGKey(0)
    kz, kw, kb, kz2 = jax.random.split(key, 4)

    # Deterministic parameter init, mimicking nn.Linear's U(-1/sqrt(in), 1/sqrt(in)).
    bound = 1.0 / jnp.sqrt(jnp.float32(z_dim))
    weight = jax.random.uniform(kw, (sl, z_dim), jnp.float32, -bound, bound)  # (out, in)
    bias = jax.random.uniform(kb, (sl,), jnp.float32, -bound, bound)
    z = jax.random.normal(kz, (batch, z_dim), jnp.float32)

    # One-time prep (kept out of the per-call path).
    weight_t, bias2d = prepare_decoder_params(weight, bias)

    # --- small-batch (gridless, fully VMEM-resident) path ---
    out = jax.block_until_ready(decoder_forward(z, weight_t, bias2d))
    ref = z @ weight.T + bias
    assert out.shape == (batch, sl)
    assert jnp.allclose(out, ref, atol=1e-5, rtol=1e-5)

    # --- large-batch (B-tiled, megacore-parallel) path, ragged final tile ---
    big_b = 8200  # > _GRIDLESS_MAX_B, not a multiple of the chosen tile
    z_big = jax.random.normal(kz2, (big_b, z_dim), jnp.float32)
    out_big = jax.block_until_ready(decoder_forward(z_big, weight_t, bias2d))
    ref_big = z_big @ weight.T + bias
    assert out_big.shape == (big_b, sl)
    assert jnp.allclose(out_big, ref_big, atol=1e-5, rtol=1e-5)

    print("KERNEL_OK")
</pallas_src>

<mosaic_0001>
module attributes {stable_mosaic.version = 11 : i64} {
  func.func @_decoder_kernel(%arg0: memref<8x32xf32, #tpu.memory_space<vmem>>, %arg1: memref<32x64xf32, #tpu.memory_space<vmem>>, %arg2: memref<1x64xf32, #tpu.memory_space<vmem>>, %arg3: memref<8x64xf32, #tpu.memory_space<vmem>>) attributes {dimension_semantics = [], scalar_prefetch = 0 : i64, scratch_operands = 0 : i64, tpu.core_type = #tpu.core_type<tc>} {
    %c0 = arith.constant 0 : index
    %c0_0 = arith.constant 0 : index
    %0 = vector.load %arg0[%c0, %c0_0] : memref<8x32xf32, #tpu.memory_space<vmem>>, vector<8x32xf32>
    %c0_1 = arith.constant 0 : index
    %c0_2 = arith.constant 0 : index
    %1 = vector.load %arg1[%c0_1, %c0_2] : memref<32x64xf32, #tpu.memory_space<vmem>>, vector<32x64xf32>
    %cst = arith.constant dense<0.000000e+00> : vector<8x64xf32>
    %2 = tpu.matmul %0, %1, %cst {dimension_numbers = #tpu.dot_dimension_numbers<[1], [0], [0], [1], [0, 0, 1, 1], [], []>} : vector<8x32xf32>, vector<32x64xf32>, vector<8x64xf32> -> vector<8x64xf32>
    %c0_3 = arith.constant 0 : index
    %c0_4 = arith.constant 0 : index
    %3 = vector.load %arg2[%c0_3, %c0_4] : memref<1x64xf32, #tpu.memory_space<vmem>>, vector<1x64xf32>
    %4 = vector.broadcast %3 : vector<1x64xf32> to vector<8x64xf32>
    %5 = arith.addf %2, %4 : vector<8x64xf32>
    %c0_5 = arith.constant 0 : index
    %c0_6 = arith.constant 0 : index
    %6 = vector.load %arg3[%c0_5, %c0_6] : memref<8x64xf32, #tpu.memory_space<vmem>>, vector<8x64xf32>
    tpu.vector_store %arg3[%c0_5, %c0_6], %5 {strides = array<i32>} : memref<8x64xf32, #tpu.memory_space<vmem>>, vector<8x64xf32>,
    return
  }
}

</mosaic_0001>

<bundles_post_ra>
// kernel: tpu_custom_call.1
= control target key start
LH: loop header
LB: loop body
LE: loop exit
PB: predicated region body
PF: predicated region fallthrough
CT: control target
= control target key end

     0   :  { %8 = vsyncpa [#allocation3], 0  ;;  %s323_s0 = inlined_call_operand.hbm [shape: f32[8,32], index: 0, kind: input, shape index: {}]   ;;  %s324_s1 = inlined_call_operand.hbm [shape: f32[32,64], index: 1, kind: input, shape index: {}]   ;;  %s325_s2 = inlined_call_operand.vmem [shape: f32[1,64], index: 2, kind: input, shape index: {}]   ;;  %s326_s3 = inlined_call_operand.hbm [shape: f32[8,64], index: 3, kind: output, shape index: {}]  }
   0x1   :  { %9 = vsyncpa [#allocation6], 0 }
   0x2   :  { %10 = vsyncpa [#allocation4], 0  ;;  %s249_s12 = smov [#allocation2]   ;;  %s250_s14 = smov [#allocation5]  }
   0x3   :  { %s17_s13 = sshll.u32 %s249_s12, 4  ;;  %s26_s15 = sshll.u32 %s250_s14, 4  ;;  %s18_s13 = int_to_ptr.vmem [resolvable:$true] %s17_s13  ;;  %s277_s15 = int_to_ptr.vmem [resolvable:$true] %s26_s15 }
   0x4   :  { %s177_s18 = scalar_lea.hbm %s323_s0, 128 }
   0x5   :  { %p178_p0 = scmp.ne.s32.totalorder %s323_s0, %s177_s18  ;;  %p181_p1 = scmp.lt.u32.totalorder %s177_s18, %s323_s0 }
   0x7   :  { %p183_p2 = pnand %p181_p1, %p178_p0 }
   0x9   :  { %186 = shalt.err (!%p183_p2)
}
   0xa   :  { %s187_s23 = scalar_lea.vmem %s18_s13, 128  ;;  %p192_p4 = scmp.lt.s32.totalorder %s18_s13, %s18_s13 }
   0xb   :  { %p188_p3 = scmp.ne.s32.totalorder %s18_s13, %s187_s23  ;;  %p193_p5 = scmp.lt.s32.totalorder %s187_s23, %s187_s23 }
   0xd   :  { %p194_p6 = por %p193_p5, %p192_p4 }
   0xf   :  { %p195_p7 = pnand %p194_p6, %p188_p3 }
  0x11   :  { %198 = shalt.err (!%p195_p7)
}
  0x12   :  { %20 = dma.hbm_to_vmem [thread:$0]  %s323_s0, 128, %s18_s13, [#allocation3]  }
  0x13   :  { %s199_s28 = scalar_lea.hbm %s324_s1, 512 }
  0x14   :  { %p200_p8 = scmp.ne.s32.totalorder %s324_s1, %s199_s28  ;;  %p203_p9 = scmp.lt.u32.totalorder %s199_s28, %s324_s1 }
  0x16   :  { %p205_p10 = pnand %p203_p9, %p200_p8 }
  0x18   :  { %208 = shalt.err (!%p205_p10)
}
  0x19   :  { %s209_s6 = scalar_lea.vmem %s277_s15, 512  ;;  %p214_p12 = scmp.lt.s32.totalorder %s277_s15, %s277_s15 }
  0x1a   :  { %p210_p11 = scmp.ne.s32.totalorder %s277_s15, %s209_s6  ;;  %p215_p13 = scmp.lt.s32.totalorder %s209_s6, %s209_s6 }
  0x1c   :  { %p216_p0 = por %p215_p13, %p214_p12 }
  0x1e   :  { %p217_p1 = pnand %p216_p0, %p210_p11 }
  0x20   :  { %220 = shalt.err (!%p217_p1)
}
  0x21   :  { %s251_s0 = smov 128   ;;  %s252_s7 = smov 8  }
  0x22   :  { %32 = dma.hbm_to_vmem [thread:$0]  %s324_s1, 512, %s277_s15, [#allocation6], %s251_s0, %s251_s0, %s252_s7  }
  0x23   :  { %243 = dma.done.wait [#allocation3], 128  }
  0x24   :  { %244 = vsyncadd [#allocation3], 4294967168 }
  0x25   :  { %245 = dma.done.wait [#allocation6], 512  }
  0x26   :  { %246 = vsyncadd [#allocation6], 4294966784  ;;  %v253_v0 = vmov 0.0|0.0   ;;  %vm254_vm0 = vmmov 0   ;;  %v255_v1 = vmov 0.0   ;;  %v42_v2 = vld [vmem:[#allocation5] sm:$0xff] }
  0x27   :  { %163 = vmatprep.subr.bf16.mxu0 %v253_v0  ;;  %160 = vmatprep.mubr.msk.f32.mxu0 %vm254_vm0, %v255_v1  ;;  %v43_v3 = vld [vmem:[#allocation5 + $0x8] sm:$0xff]  ;;  %v44_v4 = vld [vmem:[#allocation5 + $0x10] sm:$0xff]  ;;  %v45_v6 = vld [vmem:[#allocation5 + $0x18] sm:$0xff]  ;;  %vm53_vm1 = vcmask 261120   ;;  %s256_s11 = smov [#allocation7]   ;;  %vm127_vm2 = vcmask 523264  }
  0x28   :  { %v164_v5 = vpack.c.bf16 %v43_v3, %v42_v2  ;;  %v167_v7 = vpack.c.bf16 %v45_v6, %v44_v4  ;;  %v41_v8 = vld [vmem:[#allocation2] sm:$0xff]  ;;  %s135_s12 = sshll.u32 %s256_s11, 4  ;;  %s136_s12 = int_to_ptr.vmem [resolvable:$true] %s135_s12 }
  0x29   :  { %v145_v9 = vld [vmem:[%s325_s2] ss:$0 sm:$0xff]  ;;  %s221_s13 = scalar_lea.vmem %s136_s12, 128  ;;  %p226_p3 = scmp.lt.s32.totalorder %s136_s12, %s136_s12 }
  0x2a   :  { %165 = vmatpush3.bf16.msra.mxu0 %v164_v5  ;;  %p222_p2 = scmp.ne.s32.totalorder %s136_s12, %s221_s13  ;;  %p227_p4 = scmp.lt.s32.totalorder %s221_s13, %s221_s13 }
  0x2b   :  { %166 = vmatprep.subr.bf16.mxu0 %v253_v0 }
  0x2c   :  { %p228_p5 = por %p227_p4, %p226_p3 }
  0x2e   :  { %168 = vmatpush3.bf16.msra.mxu0 %v167_v7  ;;  %p229_p6 = pnand %p228_p5, %p222_p2 }
  0x31   :  { %161 = vmatmul.mubr.msk.f32.vlgmr.msra.gmra.mrb[0].mxu0 %vm53_vm1, %v41_v8 }
 0x104   :  { %v123_v10 = vpop.f32.mrb[0].mxu0 }
 0x105   :  { %v124_v11 = vadd.f32 %v145_v9, %v123_v10  ;;  %v162_v12 = vpop.f32.mrb[1].mxu0 }
 0x107   :  { %128 = vst.msk [vmem:[#allocation7] sm:$0xff] %vm127_vm2, %v124_v11 }
 0x108   :  { %232 = shalt.err (!%p229_p6)
}
 0x109   :  { %s233_s16 = scalar_lea.hbm %s326_s3, 128 }
 0x10a   :  { %p234_p7 = scmp.ne.s32.totalorder %s326_s3, %s233_s16  ;;  %p237_p8 = scmp.lt.u32.totalorder %s233_s16, %s326_s3 }
 0x10c   :  { %p239_p9 = pnand %p237_p8, %p234_p7 }
 0x10e   :  { %242 = shalt.err (!%p239_p9)
}
 0x10f   :  { %138 = dma.vmem_to_hbm [thread:$0]  %s136_s12, 128, %s326_s3, [#allocation4]  }
 0x110   :  { %247 = dma.done.wait [#allocation4], 128  }
 0x111   :  { %248 = vsyncadd [#allocation4], 4294967168 }
 0x112   :  { %142 = vsyncpa [#allocation3], 1 }
 0x113   :  { %143 = vsyncpa [#allocation6], 1 }
 0x114   :  { %144 = vsyncpa [#allocation4], 1 }

</bundles_post_ra>
